<compile_context>
chip_gen: v6e
topology: v6e:2x2x1
jax: 0.10.0
libtpu: 0.0.40
codegen_flags: <defaults>
</compile_context>

<pallas_src>
import functools

import jax
import jax.numpy as jnp
from jax.experimental import pallas as pl
from jax.experimental.pallas import tpu as pltpu


def _round_up(x, m):
    return ((x + m - 1) // m) * m


def _vmem_limit_and_tile_budget():
    """Mosaic VMEM limit (~0.75x physical) and a tile-selection budget."""
    phys = None
    try:
        info = pltpu.get_tpu_info()
        phys = getattr(info, "vmem_capacity_bytes", None)
    except Exception:
        phys = None
    if not phys:
        phys = 64 * 1024 * 1024          # conservative: v7x physical VMEM
    limit = (int(phys) * 3) // 4         # headroom for internal scratch
    budget = (limit * 3) // 5            # headroom for pipeline buffers/spills
    return int(limit), int(budget)


def _negsq_kernel(neg_prec_ref, x_ref, cbT_ref, negc2_ref, o_ref, *,
                  compute_softmax):
    # neg_prec_ref: (1,)    SMEM f32, = -precision
    # x_ref:        (tm, D) VMEM, native dtype (bf16/f32)
    # cbT_ref:      (D, Kp) VMEM, codebook^T pre-scaled by 2*precision
    # negc2_ref:    (1, Kp) VMEM f32, -precision*||c_k||^2 (padded cols = -1e30)
    x = x_ref[...]

    # Single MXU contraction per tile: x . (2p c)^T, f32 accumulation.
    cross = jnp.dot(x, cbT_ref[...], preferred_element_type=jnp.float32)  # (tm, Kp)

    # -p*||x||^2 row norm on the VPU, in f32 (only the x tile is upcast).
    xf = x.astype(jnp.float32)
    negx2 = neg_prec_ref[0] * jnp.sum(xf * xf, axis=-1, keepdims=True)    # (tm, 1)

    score = cross + negx2 + negc2_ref[...]                                # (tm, Kp)

    if compute_softmax:
        # Padded codebook columns carry a -1e30 bias -> exp underflows to 0,
        # so no explicit masking is needed.
        m = jnp.max(score, axis=-1, keepdims=True)
        e = jnp.exp(score - m)
        denom = jnp.sum(e, axis=-1, keepdims=True)
        # Exact reciprocal of the (tm, 1) denominator (approx EUP rcp was the
        # source of the previous softmax mismatch; exact costs ~nothing here).
        score = e * (1.0 / denom)

    o_ref[...] = score.astype(o_ref.dtype)


def negative_square(x, codebook, precision, compute_softmax=False,
                    out_dtype=None):
    """x: (B, T, D); codebook: (K, D); precision: python float or 0-d array.

    Returns (B, T, K) scores (or softmax probabilities).  out_dtype defaults
    to x.dtype (internal math is f32 regardless).
    """
    B, T, D = x.shape
    K, D2 = codebook.shape
    assert D == D2, "feature dims must match"
    if out_dtype is None:
        out_dtype = x.dtype

    M = B * T
    x_flat = x.reshape(M, D)                       # metadata-only reshape

    Kp = max(128, _round_up(K, 128))               # lane-dense output width

    # ---- one-time codebook prep (small K x D work, outside the hot loop) ----
    p = jnp.asarray(precision, dtype=jnp.float32).reshape(())
    cb_f32 = codebook.astype(jnp.float32)
    negc2 = (-p) * jnp.sum(cb_f32 * cb_f32, axis=-1)            # (K,) f32
    cb_scaled = (2.0 * p) * cb_f32                              # fold 2p into MXU operand
    if Kp != K:
        cb_scaled = jnp.pad(cb_scaled, ((0, Kp - K), (0, 0)))
        # Padded columns get a huge negative bias -> harmless in both paths.
        negc2 = jnp.pad(negc2, (0, Kp - K), constant_values=-1e30)
    cbT = cb_scaled.T.astype(x.dtype)                           # (D, Kp), native MXU dtype
    negc2 = negc2[None, :]                                      # (1, Kp) f32
    neg_prec = (-p).reshape((1,))                               # SMEM scalar

    # ---- row-tile selection with a proper VMEM accounting ----
    vmem_limit, budget = _vmem_limit_and_tile_budget()
    x_b = jnp.dtype(x.dtype).itemsize
    o_b = jnp.dtype(out_dtype).itemsize
    n_tmp = 3 if compute_softmax else 2             # live f32 (tm, Kp) temporaries
    tm_sel = 128
    for cand in (1024, 512, 256, 128):
        need = (2 * cand * D * x_b                  # double-buffered x tile
                + 2 * cand * Kp * o_b               # double-buffered output tile
                + 2 * Kp * D * x_b                  # resident codebook (still 2x buffered)
                + 4 * Kp * 4                        # -p*||c||^2 row
                + n_tmp * cand * Kp * 4             # f32 intermediates (cross/score/e)
                + cand * D * 4)                     # f32 upcast of x for the row norm
        if need <= budget:
            tm_sel = cand
            break

    if M <= 128:
        tm = M                                      # single full-extent block
    else:
        # keep >= ~4 grid steps so the pipeline (and both v7x cores) stay busy
        tm = min(tm_sel, max(128, _round_up(pl.cdiv(M, 4), 128)))
    grid = (pl.cdiv(M, tm),)

    kernel = functools.partial(_negsq_kernel, compute_softmax=compute_softmax)

    out = pl.pallas_call(
        kernel,
        out_shape=jax.ShapeDtypeStruct((M, Kp), out_dtype),
        grid_spec=pltpu.PrefetchScalarGridSpec(
            num_scalar_prefetch=0,
            grid=grid,
            in_specs=[
                pl.BlockSpec(memory_space=pltpu.MemorySpace.SMEM),  # -precision (1,)
                pl.BlockSpec((tm, D), lambda i: (i, 0)),            # x row tile
                pl.BlockSpec((D, Kp), lambda i: (0, 0)),            # 2p*codebook^T (resident)
                pl.BlockSpec((1, Kp), lambda i: (0, 0)),            # -p*||c||^2 row (resident)
            ],
            out_specs=pl.BlockSpec((tm, Kp), lambda i: (i, 0)),
        ),
        compiler_params=pltpu.CompilerParams(
            dimension_semantics=("parallel",),
            vmem_limit_bytes=vmem_limit,
        ),
    )(neg_prec, x_flat, cbT, negc2)

    if Kp != K:
        out = out[:, :K]
    return out.reshape(B, T, K)


if __name__ == "__main__":
    # Small, deterministic setup consistent with the module's forward:
    #   x: (B, T, D) acoustic features; codebook: (K, D); precision scalar.
    B, T, D, K = 2, 8, 32, 16
    precision = 0.5

    key = jax.random.PRNGKey(0)
    kx, kc = jax.random.split(key)
    x = jax.random.normal(kx, (B, T, D), dtype=jnp.float32)
    codebook = jax.random.normal(kc, (K, D), dtype=jnp.float32)

    # Pure-JAX reference (same math as the PyTorch loop-of-stacks).
    diff = x[:, :, None, :] - codebook[None, None, :, :]          # (B, T, K, D)
    ref = -precision * jnp.sum(diff * diff, axis=-1)              # (B, T, K)

    score = jax.block_until_ready(
        negative_square(x, codebook, precision, compute_softmax=False))
    assert score.shape == (B, T, K)
    assert jnp.allclose(score, ref, atol=1e-4, rtol=1e-4), "score mismatch"

    probs = jax.block_until_ready(
        negative_square(x, codebook, precision, compute_softmax=True))
    ref_sm = jax.nn.softmax(ref, axis=-1)
    assert jnp.allclose(probs, ref_sm, atol=1e-3, rtol=1e-3), "softmax mismatch"

    print("KERNEL_OK")
</pallas_src>

<mosaic_0001>
module attributes {stable_mosaic.version = 11 : i64} {
  func.func @_negsq_kernel(%arg0: i32, %arg1: memref<1xf32, #tpu.memory_space<smem>>, %arg2: memref<16x32xf32, #tpu.memory_space<vmem>>, %arg3: memref<32x128xf32, #tpu.memory_space<vmem>>, %arg4: memref<1x128xf32, #tpu.memory_space<vmem>>, %arg5: memref<16x128xf32, #tpu.memory_space<vmem>>) attributes {dimension_semantics = [#tpu.dimension_semantics<parallel>], iteration_bounds = array<i64: 1>, scalar_prefetch = 0 : i64, scratch_operands = 0 : i64, tpu.core_type = #tpu.core_type<tc>, window_params = [{transform_indices = @transform_0, window_bounds = array<i64: 1>}, {transform_indices = @transform_1, window_bounds = array<i64: 16, 32>}, {pipeline_mode = #tpu.pipeline_mode<synchronous>, transform_indices = @transform_2, window_bounds = array<i64: 32, 128>}, {pipeline_mode = #tpu.pipeline_mode<synchronous>, transform_indices = @transform_3, window_bounds = array<i64: 1, 128>}, {transform_indices = @transform_4, window_bounds = array<i64: 16, 128>}]} {
    %c0 = arith.constant 0 : index
    %c0_0 = arith.constant 0 : index
    %0 = vector.load %arg2[%c0, %c0_0] : memref<16x32xf32, #tpu.memory_space<vmem>>, vector<16x32xf32>
    %c0_1 = arith.constant 0 : index
    %c0_2 = arith.constant 0 : index
    %1 = vector.load %arg3[%c0_1, %c0_2] : memref<32x128xf32, #tpu.memory_space<vmem>>, vector<32x128xf32>
    %cst = arith.constant dense<0.000000e+00> : vector<16x128xf32>
    %2 = tpu.matmul %0, %1, %cst {dimension_numbers = #tpu.dot_dimension_numbers<[1], [0], [0], [1], [0, 0, 1, 1], [], []>} : vector<16x32xf32>, vector<32x128xf32>, vector<16x128xf32> -> vector<16x128xf32>
    %c0_3 = arith.constant 0 : index
    %3 = memref.load %arg1[%c0_3] : memref<1xf32, #tpu.memory_space<smem>>
    %4 = arith.mulf %0, %0 : vector<16x32xf32>
    %cst_4 = arith.constant dense<0.000000e+00> : vector<16xf32>
    %5 = vector.multi_reduction <add>, %4, %cst_4 [1] : vector<16x32xf32> to vector<16xf32>
    %6 = vector.shape_cast %5 : vector<16xf32> to vector<16x1xf32>
    %7 = vector.broadcast %3 : f32 to vector<16x1xf32>
    %8 = arith.mulf %7, %6 : vector<16x1xf32>
    %9 = vector.broadcast %8 : vector<16x1xf32> to vector<16x128xf32>
    %10 = arith.addf %2, %9 : vector<16x128xf32>
    %c0_5 = arith.constant 0 : index
    %c0_6 = arith.constant 0 : index
    %11 = vector.load %arg4[%c0_5, %c0_6] : memref<1x128xf32, #tpu.memory_space<vmem>>, vector<1x128xf32>
    %12 = vector.broadcast %11 : vector<1x128xf32> to vector<16x128xf32>
    %13 = arith.addf %10, %12 : vector<16x128xf32>
    %c0_7 = arith.constant 0 : index
    %c0_8 = arith.constant 0 : index
    %14 = vector.load %arg5[%c0_7, %c0_8] : memref<16x128xf32, #tpu.memory_space<vmem>>, vector<16x128xf32>
    tpu.vector_store %arg5[%c0_7, %c0_8], %13 {strides = array<i32>} : memref<16x128xf32, #tpu.memory_space<vmem>>, vector<16x128xf32>,
    return
  }
  func.func @transform_0(%arg0: i32) -> i32 {
    %c0_i32 = arith.constant 0 : i32
    %c0_i32_0 = arith.constant 0 : i32
    return %c0_i32 : i32
  }
  func.func @transform_1(%arg0: i32) -> (i32, i32) {
    %c0_i32 = arith.constant 0 : i32
    %c0_i32_0 = arith.constant 0 : i32
    return %arg0, %c0_i32 : i32, i32
  }
  func.func @transform_2(%arg0: i32) -> (i32, i32) {
    %c0_i32 = arith.constant 0 : i32
    %c0_i32_0 = arith.constant 0 : i32
    %c0_i32_1 = arith.constant 0 : i32
    return %c0_i32, %c0_i32_0 : i32, i32
  }
  func.func @transform_3(%arg0: i32) -> (i32, i32) {
    %c0_i32 = arith.constant 0 : i32
    %c0_i32_0 = arith.constant 0 : i32
    %c0_i32_1 = arith.constant 0 : i32
    return %c0_i32, %c0_i32_0 : i32, i32
  }
  func.func @transform_4(%arg0: i32) -> (i32, i32) {
    %c0_i32 = arith.constant 0 : i32
    %c0_i32_0 = arith.constant 0 : i32
    return %arg0, %c0_i32 : i32, i32
  }
}

</mosaic_0001>

<bundles_post_ra>
// kernel: tpu_custom_call.1
= control target key start
LH: loop header
LB: loop body
LE: loop exit
PB: predicated region body
PF: predicated region fallthrough
CT: control target
= control target key end

     0   :  { %10 = vsyncpa [#allocation4], 0  ;;  %s325_s0 = inlined_call_operand.<no memory space> [shape: f32[1], index: 0, kind: input, shape index: {}]   ;;  %s326_s1 = inlined_call_operand.hbm [shape: f32[16,32], index: 1, kind: input, shape index: {}]   ;;  %s327_s2 = inlined_call_operand.hbm [shape: f32[32,128], index: 2, kind: input, shape index: {}]   ;;  %s328_s3 = inlined_call_operand.vmem [shape: f32[1,128], index: 3, kind: input, shape index: {}]   ;;  %s329_s4 = inlined_call_operand.hbm [shape: f32[16,128], index: 4, kind: output, shape index: {}]  }
   0x1   :  { %11 = vsyncpa [#allocation7], 0 }
   0x2   :  { %12 = vsyncpa [#allocation5], 0  ;;  %s267_s15 = smov [#allocation3]  }
   0x3   :  { %s20_s16 = sshll.u32 %s267_s15, 4  ;;  %s21_s16 = int_to_ptr.vmem [resolvable:$true] %s20_s16 }
   0x4   :  { %s209_s17 = scalar_lea.vmem %s21_s16, 256  ;;  %p214_p1 = scmp.lt.s32.totalorder %s21_s16, %s21_s16 }
   0x5   :  { %p210_p0 = scmp.ne.s32.totalorder %s21_s16, %s209_s17  ;;  %p215_p2 = scmp.lt.s32.totalorder %s209_s17, %s209_s17 }
   0x7   :  { %p216_p3 = por %p215_p2, %p214_p1 }
   0x9   :  { %p217_p4 = pnand %p216_p3, %p210_p0 }
   0xb   :  { %220 = shalt.err (!%p217_p4)
}
   0xc   :  { %s268_s18 = smov 128   ;;  %s269_s19 = smov 8  }
   0xd   :  { %26 = dma.hbm_to_vmem [thread:$0]  %s326_s1, 256, %s21_s16, [#allocation4], %s268_s18, %s268_s18, %s269_s19  }
   0xe   :  { %s270_s22 = smov [#allocation6]  }
   0xf   :  { %s32_s23 = sshll.u32 %s270_s22, 4  ;;  %s33_s23 = int_to_ptr.vmem [resolvable:$true] %s32_s23 }
  0x10   :  { %s229_s24 = scalar_lea.vmem %s33_s23, 512  ;;  %p234_p6 = scmp.lt.s32.totalorder %s33_s23, %s33_s23 }
  0x11   :  { %p230_p5 = scmp.ne.s32.totalorder %s33_s23, %s229_s24  ;;  %p235_p7 = scmp.lt.s32.totalorder %s229_s24, %s229_s24 }
  0x13   :  { %p236_p8 = por %p235_p7, %p234_p6 }
  0x15   :  { %p237_p9 = pnand %p236_p8, %p230_p5 }
  0x17   :  { %240 = shalt.err (!%p237_p9)
}
  0x18   :  { %38 = dma.hbm_to_vmem [thread:$0]  %s327_s2, 512, %s33_s23, [#allocation7], %s268_s18, %s268_s18, %s269_s19  }
  0x19   :  { %261 = dma.done.wait [#allocation4], 256  }
  0x1a   :  { %262 = vsyncadd [#allocation4], 4294967040 }
  0x1b   :  { %263 = dma.done.wait [#allocation7], 512  }
  0x1c   :  { %264 = vsyncadd [#allocation7], 4294966784  ;;  %vm56_vm0 = vcmask 261120   ;;  %v52_v0 = vld [vmem:[#allocation6 + $0x18] sm:$0xff]  ;;  %v51_v1 = vld [vmem:[#allocation6 + $0x10] sm:$0xff]  ;;  %v63_v12 = vstv %s325_s0  ;;  %s271_s29 = smov [#allocation8]  }
  0x1d   :  { %185 = vmatprep.subr.mxu0 %v52_v0  ;;  %v47_v2 = vld [vmem:[#allocation3] sm:$0xff]  ;;  %v48_v3 = vld [vmem:[#allocation3 + $0x8] sm:$0xff]  ;;  %v50_v4 = vld [vmem:[#allocation6 + $0x8] sm:$0xff]  ;;  %s163_s30 = sshll.u32 %s271_s29, 4  ;;  %s164_s30 = int_to_ptr.vmem [resolvable:$true] %s163_s30 }
  0x1e   :  { %186 = vmatpush3.msra.mxu0 %v52_v0  ;;  %v54_v5 = vmul.f32 %v47_v2, %v47_v2  ;;  %193 = vmatprep.mubr.msk.f32.mxu0 %vm56_vm0, %v47_v2  ;;  %v55_v6 = vmul.f32 %v48_v3, %v48_v3  ;;  %v49_v7 = vld [vmem:[#allocation6] sm:$0xff]  ;;  %v178_v15 = vld [vmem:[%s328_s3] ss:$0 sm:$0xff]  ;;  %s241_s5 = scalar_lea.vmem %s164_s30, 256  ;;  %p246_p11 = scmp.lt.s32.totalorder %s164_s30, %s164_s30 }
  0x1f   :  { %187 = vmatprep.subr.mxu0 %v51_v1  ;;  %p242_p10 = scmp.ne.s32.totalorder %s164_s30, %s241_s5  ;;  %p247_p12 = scmp.lt.s32.totalorder %s241_s5, %s241_s5 }
  0x20   :  { %188 = vmatpush3.msra.mxu0 %v51_v1  ;;  %v57_v8 = vsel %vm56_vm0, %v54_v5, 0.0  ;;  %v60_v9 = vsel %vm56_vm0, %v55_v6, 0.0 }
  0x21   :  { %189 = vmatprep.subr.mxu0 %v50_v4  ;;  %58 = vadd.xlane.f32.xlu0 %v57_v8  ;;  %p248_p13 = por %p247_p12, %p246_p11 }
  0x22   :  { %190 = vmatpush3.msra.mxu0 %v50_v4 }
  0x23   :  { %191 = vmatprep.subr.mxu0 %v49_v7  ;;  %p249_p0 = pnand %p248_p13, %p242_p10 }
  0x24   :  { %192 = vmatpush3.msra.mxu0 %v49_v7 }
  0x25   :  { %194 = vmatmul.mubr.msk.f32.vlgmr.msra.gmra.mxu0 %vm56_vm0, %v48_v3  ;;  %61 = vadd.xlane.f32.xlu0 %v60_v9 }
  0xaa   :  { %v59_v10 = vpop.xlane.xlu0 %58 }
  0xab   :  { %v64_v16 = vmul.f32 %v63_v12, %v59_v10 }
  0xae   :  { %v62_v11 = vpop.xlane.xlu0 %61 }
  0xaf   :  { %v65_v13 = vmul.f32 %v63_v12, %v62_v11 }
  0xe5   :  { %v195_v14 = vpop.f32.mrf.mxu0 }
  0xe6   :  { %v144_v17 = vadd.f32 %v195_v14, %v65_v13 }
  0xe7   :  { %v138_v18 = vpop.f32.mrf.mxu0 }
  0xe8   :  { %v155_v19 = vadd.f32 %v178_v15, %v144_v17  ;;  %v139_v20 = vadd.f32 %v138_v18, %v64_v16 }
  0xea   :  { %157 = vst [vmem:[#allocation8 + $0x8] sm:$0xff] %v155_v19  ;;  %v154_v21 = vadd.f32 %v178_v15, %v139_v20 }
  0xec   :  { %156 = vst [vmem:[#allocation8] sm:$0xff] %v154_v21 }
  0xed   :  { %252 = shalt.err (!%p249_p0)
}
  0xee   :  { %169 = dma.vmem_to_hbm [thread:$0]  %s164_s30, 256, %s329_s4, [#allocation5], %s268_s18, %s268_s18, %s269_s19  }
  0xef   :  { %265 = dma.done.wait [#allocation5], 256  }
  0xf0   :  { %266 = vsyncadd [#allocation5], 4294967040 }
  0xf1   :  { %173 = vsyncpa [#allocation4], 1 }
  0xf2   :  { %174 = vsyncpa [#allocation7], 1 }
  0xf3   :  { %175 = vsyncpa [#allocation5], 1 }

</bundles_post_ra>
